<compile_context>
chip_gen: v7x
topology: tpu7x:2x2x1
jax: 0.10.0
libtpu: 0.0.40
codegen_flags: <defaults>
</compile_context>

<pallas_src>
import functools

import numpy as np
import jax
import jax.numpy as jnp
from jax.experimental import pallas as pl
from jax.experimental.pallas import tpu as pltpu


# ----------------------------------------------------------------------------
# Static linear operators for AdaptiveAvgPool2d and bilinear interpolation
# (exact PyTorch semantics, built with numpy at trace time).
# ----------------------------------------------------------------------------
def _adaptive_pool_matrix(in_size: int, out_size: int) -> np.ndarray:
    """P[i, j] such that pooled = P @ x reproduces nn.AdaptiveAvgPool2d."""
    P = np.zeros((out_size, in_size), np.float32)
    for i in range(out_size):
        start = (i * in_size) // out_size
        end = -(-((i + 1) * in_size) // out_size)  # ceil division
        P[i, start:end] = 1.0 / (end - start)
    return P


def _bilinear_upsample_matrix(out_size: int, in_size: int) -> np.ndarray:
    """U[o, i] reproducing F.interpolate(mode='bilinear', align_corners=False)
    along one spatial axis."""
    U = np.zeros((out_size, in_size), np.float32)
    scale = in_size / out_size
    for o in range(out_size):
        src = (o + 0.5) * scale - 0.5
        if src < 0.0:
            src = 0.0
        i0 = min(int(np.floor(src)), in_size - 1)
        i1 = min(i0 + 1, in_size - 1)
        l1 = src - i0
        U[o, i0] += 1.0 - l1
        U[o, i1] += l1
    return U


def _round_up(x: int, m: int) -> int:
    return ((x + m - 1) // m) * m


def _cdiv(a: int, b: int) -> int:
    return -(-a // b)


# ----------------------------------------------------------------------------
# Generation-aware tile / VMEM selection.
# ----------------------------------------------------------------------------
def _tpu_vmem_capacity_bytes() -> int:
    """Best-effort physical per-core VMEM capacity (bytes)."""
    try:
        info = pltpu.get_tpu_info()
        for attr in ("vmem_capacity_bytes", "vmem_size_bytes", "vmem_bytes"):
            v = getattr(info, attr, None)
            if v:
                return int(v)
    except Exception:
        pass
    try:
        kind = jax.devices()[0].device_kind.lower()
        if "v7" in kind:
            return 64 * 1024 * 1024
    except Exception:
        pass
    return 128 * 1024 * 1024  # v5e / v6e


def _kernel_vmem_bytes(tm: int, C: int, OUT: int, kp: int) -> int:
    """Conservative per-step VMEM footprint (all operands double-buffered)."""
    x_tile = C * tm * 4 * 2          # f32 feats tile
    u_tile = kp * tm * 2 * 2         # bf16 upsample tile
    lows = OUT * kp * 2 * 2          # bf16 folded pyramid block (per batch)
    bias = OUT * 1 * 4 * 2           # f32 bias
    w_t = OUT * C * 2 * 2            # bf16 resident weight
    out_t = OUT * tm * 4 * 2         # f32 output tile
    return x_tile + u_tile + lows + bias + w_t + out_t


def _select_tiling(L: int, C: int, OUT: int, kp: int, n_batch: int):
    """Pick (tm, vmem_limit_bytes) for the current TPU generation."""
    cap = _tpu_vmem_capacity_bytes()
    if cap <= 80 * 1024 * 1024:
        # v7x-class: 64 MiB per TC.  Leave headroom for internal scratch and
        # cap the tile so double-buffers never crowd out the pipeline.
        vmem_limit = min(cap - 12 * 1024 * 1024, 52 * 1024 * 1024)
        tm_max = 1024
    else:
        # v5e / v6e: 128 MiB physical -> allow big tiles to amortize per-step
        # overhead and approach the HBM roofline.
        vmem_limit = 100 * 1024 * 1024
        tm_max = 2048
    budget = vmem_limit - 4 * 1024 * 1024  # headroom for compiler scratch

    l_pad = _round_up(L, 128)
    candidates = list(range(128, min(tm_max, l_pad) + 1, 128))

    def feasible(tm):
        if _kernel_vmem_bytes(tm, C, OUT, kp) > budget:
            return False
        # Keep >=2 grid items when N == 1 so both v7x TCs get work (harmless
        # on single-TC chips).
        if n_batch == 1 and l_pad >= 256 and _cdiv(L, tm) < 2:
            return False
        return True

    feas = [tm for tm in candidates if feasible(tm)]
    if not feas:
        feas = [128]
    # Minimize ragged last-tile waste (masked-but-still-computed columns);
    # tie-break towards the larger tile.
    best = min(feas, key=lambda tm: (_cdiv(L, tm) * tm - L, -tm))
    return best, vmem_limit


# ----------------------------------------------------------------------------
# Pallas kernel: relu( Wt @ X + lows @ U + bias )
#   X    : (1, C, TM)   f32  (cast to bf16 in-kernel) -- spatial on lanes
#   lows : (1, OUT, Kp) bf16 (folded pyramid stage results, per batch)
#   U    : (Kp, TM)     bf16 (static combined bilinear-upsample operator)
#   bias : (OUT, 1)     f32
#   Wt   : (OUT, C)     bf16 (resident, tiny)
#   out  : (1, OUT, TM) f32
# ----------------------------------------------------------------------------
def _bottleneck_kernel(x_ref, lows_ref, u_ref, bias_ref, wt_ref, o_ref):
    x_bf = x_ref[0].astype(jnp.bfloat16)                               # (C, TM)
    acc = jnp.dot(wt_ref[...], x_bf, preferred_element_type=jnp.float32)
    prior = jnp.dot(lows_ref[0], u_ref[...],
                    preferred_element_type=jnp.float32)                # (OUT, TM)
    o_ref[0] = jnp.maximum(acc + prior + bias_ref[...], 0.0).astype(o_ref.dtype)


def bottleneck_conv_relu(x_ncl, lows, u_all, bias, w_t):
    """x_ncl: (N, C, L) f32, lows: (N, OUT, Kp) bf16, u_all: (Kp, L) bf16,
    bias: (OUT, 1) f32, w_t: (OUT, C) bf16.
    Returns relu(w_t @ x + lows @ u_all + bias): (N, OUT, L) f32."""
    N, C, L = x_ncl.shape
    OUT, KP = lows.shape[1], lows.shape[2]
    tm, vmem_limit = _select_tiling(L, C, OUT, KP, N)
    grid = (N, _cdiv(L, tm))
    # Note: the resident (OUT, C) weight could be single-buffered with
    # pipeline_mode=pl.Buffered(1) to save one VMEM buffer; not applied here
    # since the footprint already fits comfortably within the budget above.
    return pl.pallas_call(
        _bottleneck_kernel,
        out_shape=jax.ShapeDtypeStruct((N, OUT, L), jnp.float32),
        grid_spec=pltpu.PrefetchScalarGridSpec(
            num_scalar_prefetch=0,
            grid=grid,
            in_specs=[
                pl.BlockSpec((1, C, tm), lambda n, j: (n, 0, j)),     # feats tile (f32)
                pl.BlockSpec((1, OUT, KP), lambda n, j: (n, 0, 0)),   # folded pyramid
                pl.BlockSpec((KP, tm), lambda n, j: (0, j)),          # upsample tile
                pl.BlockSpec((OUT, 1), lambda n, j: (0, 0)),          # bias (f32)
                pl.BlockSpec((OUT, C), lambda n, j: (0, 0)),          # weight (resident)
            ],
            out_specs=pl.BlockSpec((1, OUT, tm), lambda n, j: (n, 0, j)),
        ),
        compiler_params=pltpu.CompilerParams(
            dimension_semantics=("parallel", "parallel"),
            vmem_limit_bytes=vmem_limit,
        ),
    )(x_ncl, lows, u_all, bias, w_t)


# ----------------------------------------------------------------------------
# Input preparation: fold the pyramid branches into tiny side inputs.
# ----------------------------------------------------------------------------
def _prepare_bottleneck_inputs(feats, stage_weights, wb, bb, sizes,
                               compute_dtype):
    """Returns (x_ncl, lows, u_all, bias, w_t) for the Pallas kernel."""
    N, C, H, W = feats.shape
    OUT = wb.shape[1]

    # Single pass over feats for all stage row-pools (one HBM read of feats
    # in prep), then tiny per-stage column-pools / folds.
    Ph_all = np.concatenate([_adaptive_pool_matrix(H, s) for s in sizes], axis=0)
    t = jnp.einsum('ph,nchw->ncpw', jnp.asarray(Ph_all), feats)      # (N,C,sum_s,W)

    lows_list, u_blocks = [], []
    row = 0
    for idx, s in enumerate(sizes):
        Ws = stage_weights[idx]
        Pw = jnp.asarray(_adaptive_pool_matrix(W, s))
        pooled = jnp.einsum('ncpw,jw->ncpj', t[:, :, row:row + s, :], Pw)  # (N,C,s,s)
        row += s
        # Stage 1x1 conv composed with the matching bottleneck weight slice.
        w_fold = Ws.T @ wb[idx * C:(idx + 1) * C, :]                       # (C, OUT)
        low = jnp.einsum('cd,ncij->ndij', w_fold, pooled)                  # (N,OUT,s,s)
        lows_list.append(low.reshape(N, OUT, s * s))
        # Separable bilinear upsample -> one (s*s, H*W) Kronecker block.
        Uh = _bilinear_upsample_matrix(H, s)
        Uw = _bilinear_upsample_matrix(W, s)
        u_blocks.append(np.kron(Uh, Uw).T)                                 # (s*s, H*W)

    kp_raw = sum(s * s for s in sizes)
    kp = _round_up(kp_raw, 64)  # zero-pad contraction dim to a layout-friendly size
    lows = jnp.concatenate(lows_list, axis=2)                              # (N,OUT,kp_raw)
    if kp != kp_raw:
        lows = jnp.pad(lows, ((0, 0), (0, 0), (0, kp - kp_raw)))
    lows = lows.astype(compute_dtype)

    u_np = np.concatenate(u_blocks, axis=0)                                # (kp_raw,H*W)
    if kp != kp_raw:
        u_np = np.concatenate(
            [u_np, np.zeros((kp - kp_raw, H * W), np.float32)], axis=0)
    u_all = jnp.asarray(u_np, dtype=compute_dtype)                         # (kp, H*W)

    x_ncl = feats.reshape(N, C, H * W)                        # f32; cast to bf16 in-kernel
    w_t = jnp.transpose(wb[len(sizes) * C:, :]).astype(compute_dtype)      # (OUT, C)
    bias = bb.reshape(OUT, 1).astype(jnp.float32)
    return x_ncl, lows, u_all, bias, w_t


# ----------------------------------------------------------------------------
# Full PSPModule forward (NCHW in -> NCHW out, like PyTorch).
# ----------------------------------------------------------------------------
def psp_forward(feats, stage_weights, wb, bb, *, sizes=(1, 2, 3, 6),
                compute_dtype=jnp.bfloat16):
    N, C, H, W = feats.shape
    OUT = wb.shape[1]
    x_ncl, lows, u_all, bias, w_t = _prepare_bottleneck_inputs(
        feats, stage_weights, wb, bb, sizes, compute_dtype)
    out = bottleneck_conv_relu(x_ncl, lows, u_all, bias, w_t)   # (N, OUT, H*W)
    return out.reshape(N, OUT, H, W)


# ----------------------------------------------------------------------------
# References.
# ----------------------------------------------------------------------------
def _psp_forward_matched_ref(feats, stage_weights, wb, bb, *, sizes,
                             compute_dtype=jnp.bfloat16):
    """Plain-JAX version of exactly what the Pallas path computes (same fold,
    same bf16 casts, f32 accumulation) -- tight-tolerance check of the kernel."""
    N, C, H, W = feats.shape
    OUT = wb.shape[1]
    x_ncl, lows, u_all, bias, w_t = _prepare_bottleneck_inputs(
        feats, stage_weights, wb, bb, sizes, compute_dtype)
    acc = jnp.einsum('dc,ncl->ndl', w_t, x_ncl.astype(compute_dtype),
                     preferred_element_type=jnp.float32)
    prior = jnp.einsum('ndp,pl->ndl', lows, u_all,
                       preferred_element_type=jnp.float32)
    out = jnp.maximum(acc + prior + bias[None], 0.0)
    return out.reshape(N, OUT, H, W)


def _psp_forward_literal_ref(feats, stage_weights, wb, bb, *, sizes):
    """Literal PyTorch-equivalent path (pool -> conv -> upsample -> concat ->
    1x1 conv + bias -> relu), all f32 -- loose-tolerance semantic check."""
    N, C, H, W = feats.shape
    priors = []
    for s, Ws in zip(sizes, stage_weights):
        Ph = jnp.asarray(_adaptive_pool_matrix(H, s))
        Pw = jnp.asarray(_adaptive_pool_matrix(W, s))
        Uh = jnp.asarray(_bilinear_upsample_matrix(H, s))
        Uw = jnp.asarray(_bilinear_upsample_matrix(W, s))
        pooled = jnp.einsum('ih,nchw,jw->ncij', Ph, feats, Pw)
        conved = jnp.einsum('dc,ncij->ndij', Ws, pooled)
        priors.append(jnp.einsum('hi,ndij,wj->ndhw', Uh, conved, Uw))
    priors.append(feats)
    z = jnp.concatenate(priors, axis=1)                      # (N, 5C, H, W)
    out = jnp.einsum('nkhw,kd->ndhw', z, wb,
                     precision=jax.lax.Precision.HIGHEST)
    out = out + bb.reshape(1, -1, 1, 1)
    return jnp.maximum(out, 0.0)


if __name__ == "__main__":
    # Small, deterministic example consistent with the module's forward.
    N, C, H, W = 2, 4, 16, 16
    sizes = (1, 2, 3, 6)
    OUT = 32  # out_features (1024 in the original module; small here)

    key = jax.random.PRNGKey(0)
    k_feats, k_stage, k_wb, k_bb = jax.random.split(key, 4)
    feats = jax.random.normal(k_feats, (N, C, H, W), jnp.float32)
    stage_weights = tuple(
        0.1 * jax.random.normal(k, (C, C), jnp.float32)
        for k in jax.random.split(k_stage, len(sizes)))
    wb = 0.1 * jax.random.normal(k_wb, (C * (len(sizes) + 1), OUT), jnp.float32)
    bb = 0.1 * jax.random.normal(k_bb, (OUT,), jnp.float32)

    fwd = jax.jit(functools.partial(psp_forward, sizes=sizes))
    out = jax.block_until_ready(fwd(feats, stage_weights, wb, bb))
    assert out.shape == (N, OUT, H, W)

    # 1) Tight check: Pallas kernel vs plain-JAX computation of the same
    #    folded, bf16-input / f32-accumulate math.
    ref_matched = jax.block_until_ready(
        _psp_forward_matched_ref(feats, stage_weights, wb, bb, sizes=sizes))
    np.testing.assert_allclose(np.asarray(out), np.asarray(ref_matched),
                               rtol=2e-4, atol=2e-4)

    # 2) Semantic check vs the literal f32 PyTorch-equivalent path (loose
    #    tolerance accounts for bf16 MXU inputs on the hot path).
    ref_literal = jax.block_until_ready(
        _psp_forward_literal_ref(feats, stage_weights, wb, bb, sizes=sizes))
    np.testing.assert_allclose(np.asarray(out), np.asarray(ref_literal),
                               rtol=2e-2, atol=2e-2)

    print("KERNEL_OK")
</pallas_src>

<mosaic_0001>
module attributes {stable_mosaic.version = 11 : i64} {
  func.func @_bottleneck_kernel(%arg0: i32, %arg1: i32, %arg2: memref<1x4x256xf32, #tpu.memory_space<vmem>>, %arg3: memref<1x32x64xbf16, #tpu.memory_space<vmem>>, %arg4: memref<64x256xbf16, #tpu.memory_space<vmem>>, %arg5: memref<32x1xf32, #tpu.memory_space<vmem>>, %arg6: memref<32x4xbf16, #tpu.memory_space<vmem>>, %arg7: memref<1x32x256xf32, #tpu.memory_space<vmem>>) attributes {dimension_semantics = [#tpu.dimension_semantics<parallel>, #tpu.dimension_semantics<parallel>], iteration_bounds = array<i64: 2, 1>, scalar_prefetch = 0 : i64, scratch_operands = 0 : i64, tpu.core_type = #tpu.core_type<tc>, window_params = [{transform_indices = @transform_0, window_bounds = array<i64: 1, 4, 256>}, {transform_indices = @transform_1, window_bounds = array<i64: 1, 32, 64>}, {transform_indices = @transform_2, window_bounds = array<i64: 64, 256>}, {pipeline_mode = #tpu.pipeline_mode<synchronous>, transform_indices = @transform_3, window_bounds = array<i64: 32, 1>}, {pipeline_mode = #tpu.pipeline_mode<synchronous>, transform_indices = @transform_4, window_bounds = array<i64: 32, 4>}, {transform_indices = @transform_5, window_bounds = array<i64: 1, 32, 256>}]} {
    %c0 = arith.constant 0 : index
    %c0_0 = arith.constant 0 : index
    %c0_1 = arith.constant 0 : index
    %0 = vector.load %arg2[%c0, %c0_0, %c0_1] : memref<1x4x256xf32, #tpu.memory_space<vmem>>, vector<1x4x256xf32>
    %1 = vector.shape_cast %0 : vector<1x4x256xf32> to vector<4x256xf32>
    %2 = arith.truncf %1 : vector<4x256xf32> to vector<4x256xbf16>
    %c0_2 = arith.constant 0 : index
    %c0_3 = arith.constant 0 : index
    %3 = vector.load %arg6[%c0_2, %c0_3] : memref<32x4xbf16, #tpu.memory_space<vmem>>, vector<32x4xbf16>
    %cst = arith.constant dense<0.000000e+00> : vector<32x256xf32>
    %4 = tpu.matmul %3, %2, %cst {dimension_numbers = #tpu.dot_dimension_numbers<[1], [0], [0], [1], [0, 0, 1, 1], [], []>} : vector<32x4xbf16>, vector<4x256xbf16>, vector<32x256xf32> -> vector<32x256xf32>
    %c0_4 = arith.constant 0 : index
    %c0_5 = arith.constant 0 : index
    %c0_6 = arith.constant 0 : index
    %5 = vector.load %arg3[%c0_4, %c0_5, %c0_6] : memref<1x32x64xbf16, #tpu.memory_space<vmem>>, vector<1x32x64xbf16>
    %6 = vector.shape_cast %5 : vector<1x32x64xbf16> to vector<32x64xbf16>
    %c0_7 = arith.constant 0 : index
    %c0_8 = arith.constant 0 : index
    %7 = vector.load %arg4[%c0_7, %c0_8] : memref<64x256xbf16, #tpu.memory_space<vmem>>, vector<64x256xbf16>
    %cst_9 = arith.constant dense<0.000000e+00> : vector<32x256xf32>
    %8 = tpu.matmul %6, %7, %cst_9 {dimension_numbers = #tpu.dot_dimension_numbers<[1], [0], [0], [1], [0, 0, 1, 1], [], []>} : vector<32x64xbf16>, vector<64x256xbf16>, vector<32x256xf32> -> vector<32x256xf32>
    %9 = arith.addf %4, %8 : vector<32x256xf32>
    %c0_10 = arith.constant 0 : index
    %c0_11 = arith.constant 0 : index
    %10 = vector.load %arg5[%c0_10, %c0_11] : memref<32x1xf32, #tpu.memory_space<vmem>>, vector<32x1xf32>
    %11 = vector.broadcast %10 : vector<32x1xf32> to vector<32x256xf32>
    %12 = arith.addf %9, %11 : vector<32x256xf32>
    %cst_12 = arith.constant 0.000000e+00 : f32
    %13 = vector.broadcast %cst_12 : f32 to vector<32x256xf32>
    %14 = arith.maximumf %12, %13 : vector<32x256xf32>
    %c0_13 = arith.constant 0 : index
    %c0_14 = arith.constant 0 : index
    %c0_15 = arith.constant 0 : index
    %15 = vector.load %arg7[%c0_13, %c0_14, %c0_15] : memref<1x32x256xf32, #tpu.memory_space<vmem>>, vector<1x32x256xf32>
    %16 = vector.shape_cast %15 : vector<1x32x256xf32> to vector<32x256xf32>
    %17 = vector.shape_cast %14 : vector<32x256xf32> to vector<1x32x256xf32>
    tpu.vector_store %arg7[%c0_13, %c0_14, %c0_15], %17 {strides = array<i32>} : memref<1x32x256xf32, #tpu.memory_space<vmem>>, vector<1x32x256xf32>,
    return
  }
  func.func @transform_0(%arg0: i32, %arg1: i32) -> (i32, i32, i32) {
    %c0_i32 = arith.constant 0 : i32
    %c0_i32_0 = arith.constant 0 : i32
    return %arg0, %c0_i32, %arg1 : i32, i32, i32
  }
  func.func @transform_1(%arg0: i32, %arg1: i32) -> (i32, i32, i32) {
    %c0_i32 = arith.constant 0 : i32
    %c0_i32_0 = arith.constant 0 : i32
    %c0_i32_1 = arith.constant 0 : i32
    return %arg0, %c0_i32, %c0_i32_0 : i32, i32, i32
  }
  func.func @transform_2(%arg0: i32, %arg1: i32) -> (i32, i32) {
    %c0_i32 = arith.constant 0 : i32
    %c0_i32_0 = arith.constant 0 : i32
    return %c0_i32, %arg1 : i32, i32
  }
  func.func @transform_3(%arg0: i32, %arg1: i32) -> (i32, i32) {
    %c0_i32 = arith.constant 0 : i32
    %c0_i32_0 = arith.constant 0 : i32
    %c0_i32_1 = arith.constant 0 : i32
    return %c0_i32, %c0_i32_0 : i32, i32
  }
  func.func @transform_4(%arg0: i32, %arg1: i32) -> (i32, i32) {
    %c0_i32 = arith.constant 0 : i32
    %c0_i32_0 = arith.constant 0 : i32
    %c0_i32_1 = arith.constant 0 : i32
    return %c0_i32, %c0_i32_0 : i32, i32
  }
  func.func @transform_5(%arg0: i32, %arg1: i32) -> (i32, i32, i32) {
    %c0_i32 = arith.constant 0 : i32
    %c0_i32_0 = arith.constant 0 : i32
    return %arg0, %c0_i32, %arg1 : i32, i32, i32
  }
}

</mosaic_0001>

<bundles_post_ra>
// kernel: psp_forward.1
= control target key start
LH: loop header
LB: loop body
LE: loop exit
PB: predicated region body
PF: predicated region fallthrough
CT: control target
= control target key end

     0   :  { %s1574_s0 = inlined_call_operand.hbm [shape: f32[2,4,256], index: 0, kind: input, shape index: {}]   ;;  %s1575_s1 = inlined_call_operand.hbm [shape: bf16[2,32,64], index: 1, kind: input, shape index: {}]   ;;  %s1576_s2 = inlined_call_operand.hbm [shape: bf16[64,256], index: 2, kind: input, shape index: {}]   ;;  %s1577_s3 = inlined_call_operand.hbm [shape: f32[32,1], index: 3, kind: input, shape index: {}]   ;;  %s1578_s4 = inlined_call_operand.hbm [shape: bf16[32,4], index: 4, kind: input, shape index: {}]   ;;  %s1579_s5 = inlined_call_operand.hbm [shape: f32[2,32,256], index: 5, kind: output, shape index: {}]  }
   0x1   :  { %1586 = sst [smem:[#allocation18_spill]] %s1574_s0 }
   0x2   :  { %1587 = sst [smem:[#allocation19_spill]] %s1576_s2 }
   0x3   :  { %10 = vsyncpa [#allocation3], 0 }
   0x4   :  { %12 = vsyncpa [#allocation3 + $0x1], 0 }
   0x5   :  { %13 = vsyncpa [#allocation6], 0 }
   0x6   :  { %15 = vsyncpa [#allocation6 + $0x1], 0 }
   0x7   :  { %16 = vsyncpa [#allocation9], 0 }
   0x8   :  { %17 = vsyncpa [#allocation4], 0 }
   0x9   :  { %19 = vsyncpa [#allocation4 + $0x1], 0  ;;  %s1227_s18 = smov 0   ;;  %s1229_s19 = smov 0  }
   0xa   :  { %s1231_s20 = smov 0   ;;  %s1233_s21 = smov 0  }
   0xb   :  { %s1235_s22 = smov 0   ;;  %s1237_s23 = smov 0  }
   0xc LB: > { %s1258_s24 = sadd.s32 4294967295, %s1182_s23   ;;  %s768_s25 = sadd.s32 4294967294, %s1182_s23   ;;  %s1182_s23 = sphi %s1237_s23, %s25_s23   ;;  %s1178_s22 = sphi %s1235_s22, %s1615_s22   ;;  %s1174_s21 = sphi %s1233_s21, %s1614_s21   ;;  %s1170_s20 = sphi %s1231_s20, %s1613_s20   ;;  %s1166_s19 = sphi %s1229_s19, %s1612_s19   ;;  %s1162_s18 = sphi %s1227_s18, %s1611_s18  }
   0xd   : > { %p59_p0 = scmp.ne.s32.totalorder %s1166_s19, %s1162_s18  ;;  %p1580_p1 = scmp.eq.s32.totalorder %s1258_s24, 0 }
   0xe   : > { %p185_p3 = scmp.eq.s32.totalorder %s768_s25, 1  ;;  %p769_p5 = scmp.ge.s32.totalorder %s1182_s23, 1 }
   0xf   : > { %p1267_p4 = por %p1580_p1, %p59_p0  ;;  %p192_p7 = scmp.lt.s32.totalorder %s1182_s23, 3 }
  0x10   : > { %p1272_p6 = por %p185_p3, %p59_p0  ;;  %s1184_s29 = smov [#allocation7]  }
  0x11   : > { %s1588_s26 = scalar_select %p1267_p4, 1, 0 }
  0x12   : > { %s1589_s27 = scalar_select %p1272_p6, 1, 0 }
  0x13   : > { %p1277_p8 = pnand %p769_p5, %p192_p7  ;;  %s207_s30 = sshll.u32 %s1184_s29, 4  ;;  %s1281_s30 = int_to_ptr.vmem [resolvable:$true] %s207_s30 }
  0x14   : > { %1590 = sst [smem:[#allocation17_spill]] %s1589_s27  ;;  %s1185_s7 = smov [#allocation8]  }
  0x15   : > { %s1591_s28 = scalar_select %p1277_p8, 1, 0 }
  0x16   : > { %p838_p9 = pneg %p1277_p8  ;;  %s220_s8 = sshll.u32 %s1185_s7, 4  ;;  %s1292_s8 = int_to_ptr.vmem [resolvable:$true] %s220_s8 }
  0x17   : > { %s1186_s9 = smov [#allocation10]   ;;  %s1593_s2 = sld [smem:[#allocation19_spill]] }
  0x18   : > { %p1288_p11 = pnand %p838_p9, %p1580_p1  ;;  %s1294_s10 = sshll.u32 %s1186_s9, 4  ;;  %s234_s10 = int_to_ptr.vmem [resolvable:$true] %s1294_s10 }
  0x1a   : > { %p1304_p13 = pneg %p1288_p11 }
  0x1d   : > { %s944_s13 = scalar_lea.hbm %s1593_s2, 1024 }
  0x1e   : > { %p945_p12 = scmp.ne.s32.totalorder %s1593_s2, %s944_s13  ;;  %p951_p5 = scmp.lt.u32.totalorder %s944_s13, %s1593_s2 }
  0x20   : > { %p947_p0 = pnand %p1304_p13, %p945_p12 }
  0x22   : > { %p948_p3 = pneg %p947_p0 }
  0x24   : > { %p953_p7 = pnand %p951_p5, %p948_p3 }
  0x26   : > { %956 = shalt.err (!%p953_p7)
}
  0x27   : > { %s957_s29 = scalar_lea.vmem %s1281_s30, 1024  ;;  %p965_p2 = scmp.lt.s32.totalorder %s1281_s30, %s1281_s30 }
  0x28   : > { %p958_p9 = scmp.ne.s32.totalorder %s1281_s30, %s957_s29  ;;  %p966_p6 = scmp.lt.s32.totalorder %s957_s29, %s957_s29 }
  0x2a   : > { %p960_p10 = pnand %p958_p9, %p1304_p13  ;;  %p967_p12 = por %p966_p6, %p965_p2 }
  0x2c   : > { %p961_p1 = pneg %p960_p10 }
  0x2e   : > { %p968_p0 = pnand %p967_p12, %p961_p1 }
  0x30   : > { %971 = shalt.err (!%p968_p0)
}
  0x31   : > { %s1187_s7 = smov 128   ;;  %s1188_s9 = smov 8  }
  0x32   : > { %841 = dma.hbm_to_vmem [thread:$0]  (!%p1288_p11), %s1593_s2, 1024, %s1281_s30, [#allocation6], %s1187_s7, %s1187_s7, %s1188_s9  }
  0x33   : > { %s972_s15 = scalar_lea.hbm %s1577_s3, 512 }
  0x34   : > { %p973_p2 = scmp.ne.s32.totalorder %s1577_s3, %s972_s15  ;;  %p979_p10 = scmp.lt.u32.totalorder %s972_s15, %s1577_s3 }
  0x36   : > { %p975_p1 = pnand %p973_p2, %p1304_p13 }
  0x38   : > { %p976_p6 = pneg %p975_p1 }
  0x3a   : > { %p981_p3 = pnand %p979_p10, %p976_p6 }
  0x3c   : > { %984 = shalt.err (!%p981_p3)
}
  0x3d   : > { %s985_s30 = scalar_lea.vmem %s1292_s8, 512  ;;  %p993_p12 = scmp.lt.s32.totalorder %s1292_s8, %s1292_s8 }
  0x3e   : > { %p986_p5 = scmp.ne.s32.totalorder %s1292_s8, %s985_s30  ;;  %p994_p0 = scmp.lt.s32.totalorder %s985_s30, %s985_s30 }
  0x40   : > { %p988_p7 = pnand %p986_p5, %p1304_p13  ;;  %p995_p2 = por %p994_p0, %p993_p12 }
  0x42   : > { %p989_p9 = pneg %p988_p7 }
  0x44   : > { %p996_p1 = pnand %p995_p2, %p989_p9 }
  0x46   : > { %999 = shalt.err (!%p996_p1)
}
  0x47   : > { %844 = dma.hbm_to_vmem [thread:$0]  (!%p1288_p11), %s1577_s3, 512, %s1292_s8, [#allocation9], %s1187_s7, %s1187_s7, %s1188_s9  }
  0x48   : > { %s1000_s14 = scalar_lea.hbm %s1578_s4, 256 }
  0x49   : > { %p1001_p6 = scmp.ne.s32.totalorder %s1578_s4, %s1000_s14  ;;  %p1007_p5 = scmp.lt.u32.totalorder %s1000_s14, %s1578_s4 }
  0x4b   : > { %p1003_p10 = pnand %p1001_p6, %p1304_p13 }
  0x4d   : > { %p1004_p3 = pneg %p1003_p10 }
  0x4f   : > { %p1009_p7 = pnand %p1007_p5, %p1004_p3 }
  0x51   : > { %1012 = shalt.err (!%p1009_p7)
}
  0x52   : > { %s1013_s30 = scalar_lea.vmem %s234_s10, 256  ;;  %p1021_p2 = scmp.lt.s32.totalorder %s234_s10, %s234_s10 }
  0x53   : > { %p1014_p9 = scmp.ne.s32.totalorder %s234_s10, %s1013_s30  ;;  %p1022_p1 = scmp.lt.s32.totalorder %s1013_s30, %s1013_s30 }
  0x55   : > { %p1016_p12 = pnand %p1014_p9, %p1304_p13  ;;  %p1023_p4 = por %p1022_p1, %p1021_p2 }
  0x57   : > { %p1017_p0 = pneg %p1016_p12 }
  0x59   : > { %p1024_p8 = pnand %p1023_p4, %p1017_p0 }
  0x5b   : > { %1027 = shalt.err (!%p1024_p8)
}
  0x5c   : > { %s1584_s8 = smov 64   ;;  %s1585_s16 = smov 4  }
  0x5d   : > { %847 = dma.hbm_to_vmem [thread:$0]  (!%p1288_p11), %s1578_s4, 256, %s234_s10, [#allocation9], %s1584_s8, %s1584_s8, %s1585_s16  }
  0x5e   : > { %s46_s27 = sadd.s32 1, %s1170_s20  ;;  %s37_s11 = sadd.s32 1, %s1178_s22 }
  0x5f   : > { %p53_p4 = scmp.ne.s32.totalorder %s1170_s20, %s1166_s19  ;;  %p39_p8 = scmp.ge.s32.totalorder %s37_s11, 2 }
  0x60   : > { %p54_p13 = scmp.eq.s32.totalorder %s1182_s23, 0  ;;  %p1595_p6 = scmp.eq.s32.totalorder %s1258_s24, 1 }
  0x61   : > { %p862_p3 = scmp.lt.s32.totalorder %s1182_s23, 2  ;;  %s1617_s11 = smov (%p39_p8, %s37_s11), 0 }
  0x62   : > { %p1377_p10 = por %p1595_p6, %p53_p4  ;;  %p55_p5 = por %p54_p13, %p53_p4 }
  0x63   : > { %s1385_s6 = sand.u32 1, %s1170_s20   ;;  %s41_s10 = ssub.s32 %s1178_s22, %s1617_s11 }
  0x64   : > { %p44_p11 = scmp.eq.s32.totalorder %s41_s10, 0  ;;  %s774_s13 = sshll.u32 %s1385_s6, 3 }
  0x65   : > { %s809_s14 = sshll.u32 %s1178_s22, 7  ;;  %s1597_s0 = sld [smem:[#allocation18_spill]] }
  0x66   : > { %s1392_s15 = scalar_select %p44_p11, %s1170_s20, %s46_s27  }
  0x67   : > { %s251_s30 = scalar_lea.vmem [#allocation2], %s774_s13  ;;  %p1403_p7 = pnand %p862_p3, %p55_p5 }
  0x68   : > { %s261_s7 = sshll.u32 %s251_s30, 4  ;;  %s777_s27 = sshll.u32 %s1385_s6, 4  ;;  %s1399_s7 = int_to_ptr.vmem [resolvable:$true] %s261_s7 }
  0x69   : > { %s248_s17 = scalar_lea.sflag [#allocation3], %s1385_s6  ;;  %p1030_p12 = pneg %p1403_p7 }
  0x6b   : > { %s1397_s29 = scalar_lea.hbm %s1597_s0, %s809_s14  ;;  %s1033_s30 = scalar_lea.hbm %s1597_s0, 256 }
  0x6c   : > { %s1028_s14 = scalar_lea.hbm %s1397_s29, 128  ;;  %p1034_p1 = scmp.lt.u32.totalorder %s1397_s29, %s1597_s0 }
  0x6d   : > { %p1029_p9 = scmp.ne.s32.totalorder %s1397_s29, %s1028_s14  ;;  %p1035_p4 = scmp.lt.u32.totalorder %s1033_s30, %s1028_s14 }
  0x6e   : > { %p1037_p13 = scmp.lt.u32.totalorder %s1028_s14, %s1397_s29 }
  0x6f   : > { %p1031_p0 = pnand %p1030_p12, %p1029_p9  ;;  %p1036_p8 = por %p1035_p4, %p1034_p1 }
  0x71   : > { %p1032_p2 = pneg %p1031_p0  ;;  %p1038_p6 = por %p1037_p13, %p1036_p8 }
  0x73   : > { %p1039_p3 = pnand %p1038_p6, %p1032_p2 }
  0x75   : > { %1042 = shalt.err (!%p1039_p3)
}
  0x76   : > { %s1043_s10 = scalar_lea.vmem %s1399_s7, 128  ;;  %s1191_s13 = smov [#allocation2]  }
  0x77   : > { %p1044_p5 = scmp.ne.s32.totalorder %s1399_s7, %s1043_s10  ;;  %s1048_s25 = sshll.u32 %s1191_s13, 4  ;;  %s1049_s25 = int_to_ptr.vmem [resolvable:$false] %s1048_s25 }
  0x78   : > { %s1050_s8 = scalar_lea.vmem %s1049_s25, 256  ;;  %p1051_p0 = scmp.lt.s32.totalorder %s1399_s7, %s1049_s25 }
  0x79   : > { %p1046_p11 = pnand %p1044_p5, %p1030_p12  ;;  %p1052_p1 = scmp.lt.s32.totalorder %s1050_s8, %s1043_s10 }
  0x7b   : > { %p1047_p9 = pneg %p1046_p11  ;;  %p1053_p4 = por %p1052_p1, %p1051_p0 }
  0x7d   : > { %p1054_p8 = pnand %p1053_p4, %p1047_p9 }
  0x7f   : > { %1057 = shalt.err (!%p1054_p8)
}
  0x80   : > { %851 = dma.hbm_to_vmem [thread:$0]  (!%p1403_p7), %s1397_s29, 128, %s1399_s7, %s248_s17  }
  0x81   : > { %s272_s16 = scalar_lea.vmem [#allocation5], %s777_s27  ;;  %s268_s30 = sand.u32 1, %s1182_s23  }
  0x82   : > { %s279_s14 = sshll.u32 %s272_s16, 4  ;;  %s1599_s13 = sshll.u32 %s1178_s22, 8  ;;  %s1438_s14 = int_to_ptr.vmem [resolvable:$true] %s279_s14 }
  0x83   : > { %s1445_s8 = scalar_lea.hbm %s1575_s1, %s1599_s13  ;;  %s1447_s0 = scalar_lea.sflag [#allocation6], %s268_s30 }
  0x84   : > { %s1058_s2 = scalar_lea.hbm %s1445_s8, 256  ;;  %s1063_s7 = scalar_lea.hbm %s1575_s1, 512 }
  0x85   : > { %p1059_p2 = scmp.ne.s32.totalorder %s1445_s8, %s1058_s2  ;;  %p1064_p3 = scmp.lt.u32.totalorder %s1445_s8, %s1575_s1 }
  0x86   : > { %p1065_p5 = scmp.lt.u32.totalorder %s1063_s7, %s1058_s2  ;;  %p1067_p9 = scmp.lt.u32.totalorder %s1058_s2, %s1445_s8 }
  0x87   : > { %p1061_p13 = pnand %p1059_p2, %p1030_p12 }
  0x88   : > { %p1066_p11 = por %p1065_p5, %p1064_p3 }
  0x89   : > { %p1062_p6 = pneg %p1061_p13 }
  0x8a   : > { %p1068_p0 = por %p1067_p9, %p1066_p11 }
  0x8c   : > { %p1069_p1 = pnand %p1068_p0, %p1062_p6 }
  0x8e   : > { %1072 = shalt.err (!%p1069_p1)
}
  0x8f   : > { %s1073_s16 = scalar_lea.vmem %s1438_s14, 256  ;;  %s1192_s30 = smov [#allocation5]  }
  0x90   : > { %p1074_p4 = scmp.ne.s32.totalorder %s1438_s14, %s1073_s16  ;;  %s1078_s13 = sshll.u32 %s1192_s30, 4  ;;  %s1079_s13 = int_to_ptr.vmem [resolvable:$false] %s1078_s13 }
  0x91   : > { %s1080_s10 = scalar_lea.vmem %s1079_s13, 512  ;;  %p1081_p13 = scmp.lt.s32.totalorder %s1438_s14, %s1079_s13 }
  0x92   : > { %p1076_p8 = pnand %p1074_p4, %p1030_p12  ;;  %p1082_p3 = scmp.lt.s32.totalorder %s1080_s10, %s1073_s16 }
  0x94   : > { %p1077_p2 = pneg %p1076_p8  ;;  %p1083_p5 = por %p1082_p3, %p1081_p13 }
  0x96   : > { %p1084_p11 = pnand %p1083_p5, %p1077_p2 }
  0x98   : > { %1087 = shalt.err (!%p1084_p11)
}
  0x99   : > { %s1600_s2 = smov 4   ;;  %s1601_s25 = smov 64  }
  0x9a   : > { %854 = dma.hbm_to_vmem [thread:$0]  (!%p1403_p7), %s1445_s8, 256, %s1438_s14, %s1447_s0, %s1601_s25, %s1601_s25, %s1600_s2  }
  0x9b   : > { %p1602_p12 = scmp.ne.s32.totalorder %s1591_s28, 0 }
  0x9c   : > { %s1479_s6 = sand.u32 (!%p1602_p12), 1, %s1166_s19   ;;  %p1603_p6 = scmp.ne.s32.totalorder (!%p1602_p12), %s1588_s26, 0 }
  0x9d   : > { %291 = sbr.rel (%p1602_p12) target bundleno = 437 (0x1b5), region = 40  ;;  %s781_s29 = sshll.u32 (!%p1602_p12), %s1479_s6, 3 }
  0x9e   : > { %s294_s7 = scalar_lea.sflag (!%p1602_p12), [#allocation3], %s1479_s6  ;;  %s297_s27 = scalar_lea.vmem (!%p1602_p12), [#allocation2], %s781_s29 }
  0xa4   : > { %1141 = dma.done.wait (%p1603_p6), %s294_s7, 128  }
  0xa5   : > { %1143 = vsyncadd (%p1603_p6), %s294_s7, 4294967168  ;;  %s302_s0 = sand.u32 1, %s1258_s24   ;;  %s782_s28 = sshll.u32 %s1479_s6, 4 }
  0xa6   : > { %s303_s9 = scalar_lea.sflag [#allocation6], %s302_s0  ;;  %s1489_s14 = scalar_lea.vmem [#allocation5], %s782_s28 }
  0xa7   : > { %1145 = dma.done.wait (%p1603_p6), %s303_s9, 256  }
  0xa8   : > { %1147 = vsyncadd (%p1603_p6), %s303_s9, 4294967040  ;;  %p1604_p7 = scmp.eq.s32.totalorder %s1258_s24, 0 }
  0xaa   : > { %1149 = dma.done.wait (%p1604_p7), [#allocation6], 1024   ;;  %p1605_p9 = pmov %p1604_p7 }
  0xab   : > { %p1606_p0 = pmov %p1604_p7 }
  0xac   : > { %1151 = vsyncadd (%p1605_p9), [#allocation6], 4294966272 }
  0xad   : > { %1153 = dma.done.wait (%p1606_p0), [#allocation9], 768   ;;  %p1607_p1 = pmov %p1606_p0 }
  0xae   : > { %v1193_v0 = vmov 0   ;;  %v927_v1 = vld [vmem:[#allocation7 + $0x4] ss:$8 sps:$4 sm:$0xff]   ;;  %v929_v2 = vld [vmem:[#allocation7] ss:$8 sps:$4 sm:$0xff]   ;;  %v354_v6 = vld [vmem:[%s297_s27] sm:$0xff] }
  0xaf   : > { %1155 = vsyncadd (%p1607_p1), [#allocation9], 4294966528  ;;  %542 = vmatprep.mubr.bf16.mxu0 %v1193_v0  ;;  %465 = vmatprep.mubr.bf16.mxu1 %v1193_v0  ;;  %v930_v3 = vld [vmem:[#allocation7 + $0x14] ss:$8 sps:$4 sm:$0xff]   ;;  %v932_v4 = vld [vmem:[#allocation7 + $0x10] ss:$8 sps:$4 sm:$0xff]   ;;  %v356_v7 = vcombine.high %v354_v6, %v354_v6  ;;  %v358_v8 = vpack.c.bf16 %v354_v6, %v354_v6 }
  0xb0   : > { %925 = vset.pattern.permute.xlu0 %v1193_v0  ;;  %926 = vset.pattern.permute.xlu1 %v1193_v0  ;;  %v933_v5 = vld [vmem:[#allocation7 + $0x24] ss:$8 sps:$4 sm:$0xff]   ;;  %vm503_vm0 = vcmask 1041408   ;;  %v935_v9 = vld [vmem:[#allocation7 + $0x20] ss:$8 sps:$4 sm:$0xff]   ;;  %vm496_vm1 = vcmask 31744  }
  0xb1   : > { %433 = vmatprep.subr.bf16.mxu1 %v927_v1  ;;  %v359_v10 = vpack.c.bf16 %v356_v7, %v356_v7  ;;  %v505_v11 = vsel %vm503_vm0, %v358_v8, 0  ;;  %v937_v12 = vld [vmem:[#allocation7 + $0x34] ss:$8 sps:$4 sm:$0xff]   ;;  %v940_v13 = vld [vmem:[#allocation10] sm:$0xff]   ;;  %v939_v16 = vld [vmem:[#allocation7 + $0x30] ss:$8 sps:$4 sm:$0xff]  }
  0xb2   : > { %434 = vmatpush1.bf16.msra.mxu1 %v929_v2  ;;  %v563_v14 = vld [vmem:[#allocation8] sm:$0xff]  ;;  %v565_v15 = vld [vmem:[#allocation8 + $0x10] sm:$0xff]  ;;  %v564_v17 = vld [vmem:[#allocation8 + $0x8] sm:$0xff]  ;;  %vm426_vm2 = vcmask 523264   ;;  %s786_s24 = sshll.u32 %s1479_s6, 6  ;;  %s811_s17 = sshll.u32 %s1174_s21, 10 }
  0xb3   : > { %435 = vmatprep.subr.bf16.mxu1 %v930_v3  ;;  %801 = vmatprep.subr.msk.bf16.mxu0 %vm503_vm0, %v359_v10  ;;  %v566_v18 = vld [vmem:[#allocation8 + $0x18] sm:$0xff]  ;;  %v941_v19 = vld [vmem:[%s1489_s14] sm:$0xff]   ;;  %v942_v20 = vld [vmem:[#allocation10 + $0x8] sm:$0xff]   ;;  %s1508_s26 = scalar_lea.vmem [#allocation11], %s786_s24  ;;  %s1522_s13 = scalar_lea.hbm %s1579_s5, %s811_s17 }
  0xb4   : > { %511 = vmatpush1.bf16.msra.mxu0 %v505_v11  ;;  %569 = vperm.xlu0 %925, %v563_v14   ;;  %v943_v21 = vld [vmem:[%s1489_s14 + $0x8] sm:$0xff]   ;;  %s627_s8 = sshll.u32 %s1508_s26, 4  ;;  %s612_s21 = scalar_lea.sflag [#allocation4], %s1479_s6  ;;  %s1516_s8 = int_to_ptr.vmem [resolvable:$true] %s627_s8 }
  0xb5   : > { %579 = vperm.xlu1 %926, %v565_v15   ;;  %s1088_s10 = scalar_lea.vmem %s1516_s8, 1024  ;;  %s1194_s2 = smov [#allocation11]  }
  0xb6   : > { %436 = vmatpush1.bf16.msra.mxu1 %v932_v4  ;;  %p1089_p4 = scmp.ne.s32.totalorder %s1516_s8, %s1088_s10  ;;  %s1092_s25 = sshll.u32 %s1194_s2, 4  ;;  %s1093_s25 = int_to_ptr.vmem [resolvable:$false] %s1092_s25 }
  0xb7   : > { %437 = vmatprep.subr.bf16.mxu1 %v933_v5  ;;  %802 = vmatmul.mubr.msk.bf16.vlgmr.msra.gmra.mrb[0].mxu0 %vm496_vm1, %v940_v13  ;;  %s1094_s29 = scalar_lea.vmem %s1093_s25, 2048  ;;  %p1095_p13 = scmp.lt.s32.totalorder %s1516_s8, %s1093_s25 }
  0xb8   : > { %552 = vmatprep.mubr.bf16.mxu0 %v1193_v0  ;;  %574 = vperm.xlu0 %925, %v564_v17   ;;  %p1090_p8 = pnand %p1089_p4, %p1377_p10  ;;  %p1096_p3 = scmp.lt.s32.totalorder %s1094_s29, %s1088_s10 }
  0xb9   : > { %584 = vperm.xlu1 %926, %v566_v18  }
  0xba   : > { %438 = vmatpush1.bf16.msra.mxu1 %v935_v9  ;;  %p1091_p2 = pneg %p1090_p8  ;;  %p1097_p5 = por %p1096_p3, %p1095_p13 }
  0xbb   : > { %439 = vmatprep.subr.bf16.mxu1 %v937_v12 }
  0xbc   : > { %p1098_p11 = pnand %p1097_p5, %p1091_p2 }
  0xbe   : > { %440 = vmatpush1.bf16.msra.mxu1 %v939_v16 }
  0xbf   : > { %803 = vmatmul.mubr.msk.bf16.gmra.mrb[4].mxu0 %vm496_vm1, %v942_v20 }
  0xc1   : > { %797 = vmatmul.mubr.msk.bf16.vlgmr.msra.gmra.mrb[0].mxu1 %vm426_vm2, %v941_v19 }
  0xc2   : > { %475 = vmatprep.mubr.bf16.mxu1 %v1193_v0 }
  0xc9   : > { %798 = vmatmul.mubr.msk.bf16.gmra.mrb[4].mxu1 %vm426_vm2, %v943_v21 }
 0x133   : > { %v570_v24 = vpop.permute.xlu0 %569 }
 0x134   : > { %v580_v45 = vpop.permute.xlu1 %579 }
 0x137   : > { %v575_v32 = vpop.permute.xlu0 %574 }
 0x138   : > { %v585_v57 = vpop.permute.xlu1 %584 }
 0x18a   : > { %v544_v22 = vpop.f32.mrb[0].mxu0 }
 0x18b   : > { %v546_v23 = vpop.f32.mrb[1].mxu0 }
 0x18c   : > { %v548_v25 = vpop.f32.mrb[2].mxu0 }
 0x18d   : > { %v550_v26 = vpop.f32.mrb[3].mxu0 }
 0x192   : > { %v554_v36 = vpop.f32.mrb[4].mxu0 }
 0x193   : > { %v556_v39 = vpop.f32.mrb[5].mxu0 }
 0x194   : > { %v467_v27 = vpop.f32.mrb[0].mxu1  ;;  %v558_v42 = vpop.f32.mrb[6].mxu0 }
 0x195   : > { %v545_v28 = vadd.f32 %v544_v22, %v467_v27  ;;  %v469_v29 = vpop.f32.mrb[1].mxu1  ;;  %v560_v46 = vpop.f32.mrb[7].mxu0 }
 0x196   : > { %v547_v30 = vadd.f32 %v546_v23, %v469_v29  ;;  %v471_v31 = vpop.f32.mrb[2].mxu1 }
 0x197   : > { %v587_v33 = vadd.f32 %v570_v24, %v545_v28  ;;  %v549_v34 = vadd.f32 %v548_v25, %v471_v31  ;;  %v473_v35 = vpop.f32.mrb[3].mxu1 }
 0x198   : > { %v588_v37 = vadd.f32 %v570_v24, %v547_v30  ;;  %v551_v38 = vadd.f32 %v550_v26, %v473_v35 }
 0x199   : > { %v595_v40 = vmax.f32 %v587_v33, 0.0  ;;  %v589_v41 = vadd.f32 %v575_v32, %v549_v34 }
 0x19a   : > { %v596_v43 = vmax.f32 %v588_v37, 0.0  ;;  %v590_v44 = vadd.f32 %v575_v32, %v551_v38 }
 0x19b   : > { %603 = vst [vmem:[%s1508_s26] sm:$0xff] %v595_v40  ;;  %v597_v47 = vmax.f32 %v589_v41, 0.0 }
 0x19c   : > { %604 = vst [vmem:[%s1508_s26 + $0x8] sm:$0xff] %v596_v43  ;;  %v598_v48 = vmax.f32 %v590_v44, 0.0  ;;  %v477_v49 = vpop.f32.mrb[4].mxu1 }
 0x19d   : > { %605 = vst [vmem:[%s1508_s26 + $0x10] sm:$0xff] %v597_v47  ;;  %v555_v50 = vadd.f32 %v554_v36, %v477_v49  ;;  %v479_v51 = vpop.f32.mrb[5].mxu1 }
 0x19e   : > { %606 = vst [vmem:[%s1508_s26 + $0x18] sm:$0xff] %v598_v48  ;;  %v557_v52 = vadd.f32 %v556_v39, %v479_v51  ;;  %v481_v53 = vpop.f32.mrb[6].mxu1 }
 0x19f   : > { %v591_v54 = vadd.f32 %v580_v45, %v555_v50  ;;  %v559_v55 = vadd.f32 %v558_v42, %v481_v53  ;;  %v483_v56 = vpop.f32.mrb[7].mxu1 }
 0x1a0   : > { %v592_v58 = vadd.f32 %v580_v45, %v557_v52  ;;  %v561_v59 = vadd.f32 %v560_v46, %v483_v56 }
 0x1a1   : > { %v599_v60 = vmax.f32 %v591_v54, 0.0  ;;  %v593_v61 = vadd.f32 %v585_v57, %v559_v55 }
 0x1a2   : > { %v600_v62 = vmax.f32 %v592_v58, 0.0  ;;  %v594_v63 = vadd.f32 %v585_v57, %v561_v59 }
 0x1a3   : > { %607 = vst [vmem:[%s1508_s26 + $0x20] sm:$0xff] %v599_v60  ;;  %v601_v0 = vmax.f32 %v593_v61, 0.0 }
 0x1a4   : > { %608 = vst [vmem:[%s1508_s26 + $0x28] sm:$0xff] %v600_v62  ;;  %v602_v1 = vmax.f32 %v594_v63, 0.0 }
 0x1a5   : > { %609 = vst [vmem:[%s1508_s26 + $0x30] sm:$0xff] %v601_v0 }
 0x1a6   : > { %610 = vst [vmem:[%s1508_s26 + $0x38] sm:$0xff] %v602_v1 }
 0x1a7   : > { %1101 = shalt.err (!%p1098_p11)
}
 0x1a8   : > { %s1102_s7 = scalar_lea.hbm %s1522_s13, 1024  ;;  %s1106_s28 = scalar_lea.hbm %s1579_s5, 2048 }
 0x1a9   : > { %p1103_p12 = scmp.ne.s32.totalorder %s1522_s13, %s1102_s7  ;;  %p1107_p9 = scmp.lt.u32.totalorder %s1522_s13, %s1579_s5 }
 0x1aa   : > { %p1108_p0 = scmp.lt.u32.totalorder %s1106_s28, %s1102_s7  ;;  %p1110_p4 = scmp.lt.u32.totalorder %s1102_s7, %s1522_s13 }
 0x1ab   : > { %p1104_p6 = pnand %p1103_p12, %p1377_p10 }
 0x1ac   : > { %p1109_p1 = por %p1108_p0, %p1107_p9 }
 0x1ad   : > { %p1105_p7 = pneg %p1104_p6 }
 0x1ae   : > { %p1111_p8 = por %p1110_p4, %p1109_p1 }
 0x1b0   : > { %p1112_p2 = pnand %p1111_p8, %p1105_p7 }
 0x1b2   : > { %1115 = shalt.err (!%p1112_p2)
}
 0x1b3   : > { %s1195_s24 = smov 256   ;;  %s1196_s26 = smov 16  }
 0x1b4   : > { %836 = dma.vmem_to_hbm [thread:$0]  (%p1377_p10), %s1516_s8, 1024, %s1522_s13, %s612_s21, %s1195_s24, %s1195_s24, %s1196_s26  }
 0x1b5 PF: > { %s1608_s17 = sld [smem:[#allocation17_spill]]  ;;  %s642_s16 = sand.u32 1, %s1162_s18  }
 0x1b6   : > { %p1610_p3 = scmp.ge.s32.totalorder %s1182_s23, 2  ;;  %s643_s30 = scalar_lea.sflag [#allocation4], %s642_s16 }
 0x1bb   : > { %p1609_p13 = scmp.ne.s32.totalorder %s1608_s17, 0 }
 0x1bd   : > { %p856_p5 = pnand %p1610_p3, %p1609_p13 }
 0x1bf   : > { %1157 = dma.done.wait (!%p856_p5), %s643_s30, 1024  }
 0x1c0   : > { %1159 = vsyncadd (!%p856_p5), %s643_s30, 4294966272  ;;  %s25_s23 = sadd.s32 1, %s1182_s23   ;;  %s1611_s18 = smov %s1166_s19 }
 0x1c1   : > { %p22_p11 = scmp.ge.s32.totalorder %s25_s23, 4   ;;  %s1612_s19 = smov %s1170_s20 }
 0x1c2   : > { %s1613_s20 = smov %s1392_s15  ;;  %s1614_s21 = smov %s1178_s22 }
 0x1c3   : > { %s1615_s22 = smov %s1617_s11  ;;  %24 = sbr.rel (!%p22_p11) target bundleno = 12 (0xc), region = 111 }
 0x1ca   :  { %648 = vsyncpa [#allocation3], 1 }
 0x1cb   :  { %650 = vsyncpa [#allocation3 + $0x1], 1 }
 0x1cc   :  { %651 = vsyncpa [#allocation6], 1 }
 0x1cd   :  { %653 = vsyncpa [#allocation6 + $0x1], 1 }
 0x1ce   :  { %654 = vsyncpa [#allocation9], 1 }
 0x1cf   :  { %655 = vsyncpa [#allocation4], 1 }
 0x1d0   :  { %657 = vsyncpa [#allocation4 + $0x1], 1 }

</bundles_post_ra>
